<compile_context>
chip_gen: v6e
topology: v6e:2x2x1
jax: 0.10.0
libtpu: 0.0.40
codegen_flags: <defaults>
</compile_context>

<pallas_src>
import functools

import jax
import jax.numpy as jnp
from jax.experimental import pallas as pl
from jax.experimental.pallas import tpu as pltpu


def _round_up(x, m):
    return ((x + m - 1) // m) * m


def _cdiv(a, b):
    return (a + b - 1) // b


def _dfl_tile_loss(pred_ref, target_ref, weight_ref, n_total):
    """Weighted per-sample DFL for one tile; returns a lane-dense (1, TN) slab."""
    tn = target_ref.shape[-1]

    # pred arrives in natural HBM layout (TN, C); upcast then transpose to
    # (C, TN) in-kernel (XLU vxpose slot -> free in this mem-bound kernel).
    pred = jnp.transpose(pred_ref[...].astype(jnp.float32))    # (C, TN)
    label = target_ref[...].astype(jnp.float32)                # (1, TN)
    w = weight_ref[...].astype(jnp.float32)                    # (1, TN)
    n_cls = pred.shape[0]

    # Numerically-stable log-sum-exp over the class (sublane) axis.
    m = jnp.max(pred, axis=0, keepdims=True)                                # (1, TN)
    lse = m + jnp.log(jnp.sum(jnp.exp(pred - m), axis=0, keepdims=True))    # (1, TN)

    # Fused two-bin gather as a hat function: sel[r] = max(0, 1 - |r - label|)
    # equals w_left at r = floor(label), w_right at r = floor(label)+1 and 0
    # elsewhere (targets >= 0, matching torch .long() truncation == floor;
    # label == C-1 exactly gives w_right == 0, same as the reference).
    rows = jax.lax.broadcasted_iota(jnp.int32, (n_cls, 1), 0).astype(jnp.float32)
    sel = jnp.maximum(1.0 - jnp.abs(rows - label), 0.0)                     # (C, TN)
    p_sel = jnp.sum(pred * sel, axis=0, keepdims=True)                      # (1, TN)

    # Mask lanes past N: the ragged last pred block reads undefined rows from
    # HBM; the select (not arithmetic) drops any NaN/Inf they might produce.
    lane = jax.lax.broadcasted_iota(jnp.int32, (1, tn), 1)
    valid = (pl.program_id(0) * tn + lane) < n_total
    return jnp.where(valid, (lse - p_sel) * w, 0.0)                         # (1, TN)


def _dfl_kernel_per_sample(pred_ref, target_ref, weight_ref, out_ref, *, n_total):
    """reduction='none': write the weighted per-sample loss (lane-dense)."""
    out_ref[...] = _dfl_tile_loss(pred_ref, target_ref, weight_ref, n_total)


def _dfl_kernel_partial_sum(pred_ref, target_ref, weight_ref, psum_ref, *, n_total):
    """reduction='sum'/'mean': write one partial sum per tile (no (1,N) HBM
    intermediate, and the 'parallel' grid semantics are preserved)."""
    loss = _dfl_tile_loss(pred_ref, target_ref, weight_ref, n_total)
    partial = jnp.sum(loss)
    r = jax.lax.broadcasted_iota(jnp.int32, (8, 128), 0)
    c = jax.lax.broadcasted_iota(jnp.int32, (8, 128), 1)
    psum_ref[...] = jnp.where((r == 0) & (c == 0), partial, 0.0)


@functools.partial(jax.jit, static_argnames=("reduction", "loss_weight", "tile_n"))
def distribution_focal_loss(pred, target, weight=None, avg_factor=None,
                            reduction="mean", loss_weight=1.0, tile_n=8192):
    """JAX/Pallas equivalent of DistributionFocalLoss.forward.

    pred:   (N, C) logits (C = n+1 bins), any float dtype (upcast in-kernel)
    target: (N,)   float distances in [0, C-1]
    weight: (N,)   optional per-sample weights
    """
    if reduction not in ("none", "mean", "sum"):
        raise ValueError(reduction)

    N, C = pred.shape
    if weight is None:
        weight = jnp.ones((N,), dtype=jnp.float32)

    # Tile sizing: lane tile is a multiple of 128, padding <= ~127 lanes/step
    # (no round-up-to-tile blow-up), and >= 2 grid steps whenever N > 128 so
    # the "parallel" axis shards across both v7x TensorCores.
    tile_cap = max(128, _round_up(min(int(tile_n), 16384), 128))
    min_steps = 2 if N > 128 else 1
    steps = max(min_steps, _cdiv(N, tile_cap))
    tile = _round_up(_cdiv(N, steps), 128)
    steps = _cdiv(N, tile)
    n_padded = steps * tile
    n_pad = n_padded - N

    # Only the tiny per-sample vectors get padded/reshaped (lane-dense (1, Np)
    # slabs); pred is consumed directly from HBM in its natural (N, C) layout.
    target_r = jnp.pad(target.astype(jnp.float32), (0, n_pad)).reshape(1, n_padded)
    weight_r = jnp.pad(weight.astype(jnp.float32), (0, n_pad)).reshape(1, n_padded)

    in_specs = [
        pl.BlockSpec((tile, C), lambda i: (i, 0)),   # pred, natural layout
        pl.BlockSpec((1, tile), lambda i: (0, i)),   # target
        pl.BlockSpec((1, tile), lambda i: (0, i)),   # weight
    ]
    cparams = pltpu.CompilerParams(
        dimension_semantics=("parallel",),
        vmem_limit_bytes=48 * 1024 * 1024,
    )

    if reduction == "none":
        loss_w = pl.pallas_call(
            functools.partial(_dfl_kernel_per_sample, n_total=N),
            out_shape=jax.ShapeDtypeStruct((1, n_padded), jnp.float32),
            grid_spec=pltpu.PrefetchScalarGridSpec(
                num_scalar_prefetch=0,
                grid=(steps,),
                in_specs=in_specs,
                out_specs=pl.BlockSpec((1, tile), lambda i: (0, i)),
            ),
            compiler_params=cparams,
        )(pred, target_r, weight_r)
        out = loss_w[0, :N]
    else:
        psums = pl.pallas_call(
            functools.partial(_dfl_kernel_partial_sum, n_total=N),
            out_shape=jax.ShapeDtypeStruct((steps * 8, 128), jnp.float32),
            grid_spec=pltpu.PrefetchScalarGridSpec(
                num_scalar_prefetch=0,
                grid=(steps,),
                in_specs=in_specs,
                out_specs=pl.BlockSpec((8, 128), lambda i: (i, 0)),
            ),
            compiler_params=cparams,
        )(pred, target_r, weight_r)
        total = jnp.sum(psums)
        if reduction == "sum":
            out = total
        else:  # mean
            denom = jnp.float32(N) if avg_factor is None else avg_factor
            out = total / denom
    return loss_weight * out


class DistributionFocalLoss:
    """Thin wrapper mirroring the PyTorch module's forward signature."""

    def __init__(self, reduction="mean", loss_weight=1.0):
        assert reduction in ("none", "mean", "sum")
        self.reduction = reduction
        self.loss_weight = loss_weight

    def __call__(self, pred, target, weight=None, avg_factor=None,
                 reduction_override=None):
        assert reduction_override in (None, "none", "mean", "sum")
        reduction = reduction_override if reduction_override else self.reduction
        return distribution_focal_loss(pred, target, weight,
                                       avg_factor=avg_factor,
                                       reduction=reduction,
                                       loss_weight=self.loss_weight)


def _reference(pred, target, weight, reduction="mean"):
    """Pure-JAX reference matching the PyTorch module."""
    pred = pred.astype(jnp.float32)
    target = target.astype(jnp.float32)
    dis_left = target.astype(jnp.int32)
    dis_right = dis_left + 1
    wl = dis_right.astype(jnp.float32) - target
    wr = target - dis_left.astype(jnp.float32)
    logp = jax.nn.log_softmax(pred, axis=-1)
    ce_l = -jnp.take_along_axis(logp, dis_left[:, None], axis=-1)[:, 0]
    ce_r = -jnp.take_along_axis(logp, dis_right[:, None], axis=-1)[:, 0]
    loss = (ce_l * wl + ce_r * wr) * weight
    if reduction == "mean":
        return jnp.mean(loss)
    if reduction == "sum":
        return jnp.sum(loss)
    return loss


if __name__ == "__main__":
    key = jax.random.PRNGKey(0)
    k1, k2, k3 = jax.random.split(key, 3)

    # K=8 positive boxes, 4 sides each -> N = 32 samples; C = 8 bins (n = 7).
    K, C = 8, 8
    N = K * 4
    pred = jax.random.normal(k1, (N, C), dtype=jnp.float32)
    target = jax.random.uniform(k2, (N,), minval=0.0, maxval=C - 1 - 1e-3,
                                dtype=jnp.float32)
    weight = jax.random.uniform(k3, (N,), minval=0.1, maxval=1.0,
                                dtype=jnp.float32)

    loss_mod = DistributionFocalLoss(reduction="mean", loss_weight=1.0)
    out = jax.block_until_ready(loss_mod(pred, target, weight))
    ref = _reference(pred, target, weight, reduction="mean")
    assert jnp.allclose(out, ref, rtol=1e-5, atol=1e-5), (out, ref)

    # Multi-tile ragged-N path (3 tiles of 128 over N=300) with per-sample
    # ('none') output; exercises the masked boundary block.
    k4, k5, k6 = jax.random.split(jax.random.PRNGKey(1), 3)
    N2 = 300
    pred2 = jax.random.normal(k4, (N2, C), dtype=jnp.float32)
    target2 = jax.random.uniform(k5, (N2,), minval=0.0, maxval=C - 1 - 1e-3,
                                 dtype=jnp.float32)
    weight2 = jax.random.uniform(k6, (N2,), minval=0.1, maxval=1.0,
                                 dtype=jnp.float32)
    out2 = jax.block_until_ready(
        distribution_focal_loss(pred2, target2, weight2,
                                reduction="none", loss_weight=1.0,
                                tile_n=128))
    ref2 = _reference(pred2, target2, weight2, reduction="none")
    assert jnp.allclose(out2, ref2, rtol=1e-5, atol=1e-5)

    # Per-tile partial-sum path ('sum', 2 tiles of 256 over N=300).
    out3 = jax.block_until_ready(
        distribution_focal_loss(pred2, target2, weight2,
                                reduction="sum", loss_weight=1.0))
    ref3 = _reference(pred2, target2, weight2, reduction="sum")
    assert jnp.allclose(out3, ref3, rtol=1e-5, atol=1e-4), (out3, ref3)

    print("KERNEL_OK")
</pallas_src>

<mosaic_0001>
module attributes {stable_mosaic.version = 11 : i64} {
  func.func @_dfl_kernel_partial_sum(%arg0: i32, %arg1: memref<128x8xf32, #tpu.memory_space<vmem>>, %arg2: memref<1x128xf32, #tpu.memory_space<vmem>>, %arg3: memref<1x128xf32, #tpu.memory_space<vmem>>, %arg4: memref<8x128xf32, #tpu.memory_space<vmem>>) attributes {dimension_semantics = [#tpu.dimension_semantics<parallel>], iteration_bounds = array<i64: 1>, scalar_prefetch = 0 : i64, scratch_operands = 0 : i64, tpu.core_type = #tpu.core_type<tc>, window_params = [{transform_indices = @transform_0, window_bounds = array<i64: 128, 8>}, {transform_indices = @transform_1, window_bounds = array<i64: 1, 128>}, {transform_indices = @transform_2, window_bounds = array<i64: 1, 128>}, {transform_indices = @transform_3, window_bounds = array<i64: 8, 128>}]} {
    %c0 = arith.constant 0 : index
    %c0_0 = arith.constant 0 : index
    %0 = vector.load %arg1[%c0, %c0_0] : memref<128x8xf32, #tpu.memory_space<vmem>>, vector<128x8xf32>
    %1 = tpu.transpose %0, [1, 0] : vector<128x8xf32> -> vector<8x128xf32>
    %c0_1 = arith.constant 0 : index
    %c0_2 = arith.constant 0 : index
    %2 = vector.load %arg2[%c0_1, %c0_2] : memref<1x128xf32, #tpu.memory_space<vmem>>, vector<1x128xf32>
    %c0_3 = arith.constant 0 : index
    %c0_4 = arith.constant 0 : index
    %3 = vector.load %arg3[%c0_3, %c0_4] : memref<1x128xf32, #tpu.memory_space<vmem>>, vector<1x128xf32>
    %cst = arith.constant dense<0xFF800000> : vector<128xf32>
    %4 = vector.multi_reduction <maximumf>, %1, %cst [0] : vector<8x128xf32> to vector<128xf32>
    %5 = vector.shape_cast %4 : vector<128xf32> to vector<1x128xf32>
    %6 = vector.broadcast %5 : vector<1x128xf32> to vector<8x128xf32>
    %7 = arith.subf %1, %6 : vector<8x128xf32>
    %8 = math.exp %7 : vector<8x128xf32>
    %cst_5 = arith.constant dense<0.000000e+00> : vector<128xf32>
    %9 = vector.multi_reduction <add>, %8, %cst_5 [0] : vector<8x128xf32> to vector<128xf32>
    %10 = vector.shape_cast %9 : vector<128xf32> to vector<1x128xf32>
    %11 = math.log %10 : vector<1x128xf32>
    %12 = arith.addf %5, %11 : vector<1x128xf32>
    %13 = tpu.iota {dimensions = array<i32: 0>} : vector<8x1xi32>
    %14 = arith.sitofp %13 : vector<8x1xi32> to vector<8x1xf32>
    %15 = vector.broadcast %14 : vector<8x1xf32> to vector<8x128xf32>
    %16 = vector.broadcast %2 : vector<1x128xf32> to vector<8x128xf32>
    %17 = arith.subf %15, %16 : vector<8x128xf32>
    %18 = math.absf %17 : vector<8x128xf32>
    %cst_6 = arith.constant 1.000000e+00 : f32
    %19 = vector.broadcast %cst_6 : f32 to vector<8x128xf32>
    %20 = arith.subf %19, %18 : vector<8x128xf32>
    %cst_7 = arith.constant 0.000000e+00 : f32
    %21 = vector.broadcast %cst_7 : f32 to vector<8x128xf32>
    %22 = arith.maximumf %20, %21 : vector<8x128xf32>
    %23 = arith.mulf %1, %22 : vector<8x128xf32>
    %cst_8 = arith.constant dense<0.000000e+00> : vector<128xf32>
    %24 = vector.multi_reduction <add>, %23, %cst_8 [0] : vector<8x128xf32> to vector<128xf32>
    %25 = vector.shape_cast %24 : vector<128xf32> to vector<1x128xf32>
    %26 = tpu.iota {dimensions = array<i32: 1>} : vector<1x128xi32>
    %c128_i32 = arith.constant 128 : i32
    %27 = arith.muli %arg0, %c128_i32 : i32
    %28 = vector.broadcast %27 : i32 to vector<1x128xi32>
    %29 = arith.addi %28, %26 : vector<1x128xi32>
    %c32_i32 = arith.constant 32 : i32
    %30 = vector.broadcast %c32_i32 : i32 to vector<1x128xi32>
    %31 = arith.cmpi slt, %29, %30 : vector<1x128xi32>
    %32 = arith.subf %12, %25 : vector<1x128xf32>
    %33 = arith.mulf %32, %3 : vector<1x128xf32>
    %cst_9 = arith.constant 0.000000e+00 : f32
    %34 = vector.broadcast %cst_9 : f32 to vector<1x128xf32>
    %35 = arith.select %31, %33, %34 : vector<1x128xi1>, vector<1x128xf32>
    %36 = vector.shape_cast %35 : vector<1x128xf32> to vector<1x1x128xf32>
    %cst_10 = arith.constant dense<0.000000e+00> : vector<1xf32>
    %37 = vector.multi_reduction <add>, %36, %cst_10 [1, 2] : vector<1x1x128xf32> to vector<1xf32>
    %38 = vector.shape_cast %37 : vector<1xf32> to vector<1x1x1xf32>
    %39 = vector.extract %38[0, 0, 0] : f32 from vector<1x1x1xf32>
    %40 = tpu.iota {dimensions = array<i32: 0>} : vector<8x128xi32>
    %41 = tpu.iota {dimensions = array<i32: 1>} : vector<8x128xi32>
    %c0_i32 = arith.constant 0 : i32
    %42 = vector.broadcast %c0_i32 : i32 to vector<8x128xi32>
    %43 = arith.cmpi eq, %40, %42 : vector<8x128xi32>
    %c0_i32_11 = arith.constant 0 : i32
    %44 = vector.broadcast %c0_i32_11 : i32 to vector<8x128xi32>
    %45 = arith.cmpi eq, %41, %44 : vector<8x128xi32>
    %46 = arith.andi %43, %45 : vector<8x128xi1>
    %cst_12 = arith.constant 0.000000e+00 : f32
    %47 = vector.broadcast %39 : f32 to vector<8x128xf32>
    %48 = vector.broadcast %cst_12 : f32 to vector<8x128xf32>
    %49 = arith.select %46, %47, %48 : vector<8x128xi1>, vector<8x128xf32>
    %c0_13 = arith.constant 0 : index
    %c0_14 = arith.constant 0 : index
    %50 = vector.load %arg4[%c0_13, %c0_14] : memref<8x128xf32, #tpu.memory_space<vmem>>, vector<8x128xf32>
    tpu.vector_store %arg4[%c0_13, %c0_14], %49 {strides = array<i32>} : memref<8x128xf32, #tpu.memory_space<vmem>>, vector<8x128xf32>,
    return
  }
  func.func @transform_0(%arg0: i32) -> (i32, i32) {
    %c0_i32 = arith.constant 0 : i32
    %c0_i32_0 = arith.constant 0 : i32
    return %arg0, %c0_i32 : i32, i32
  }
  func.func @transform_1(%arg0: i32) -> (i32, i32) {
    %c0_i32 = arith.constant 0 : i32
    %c0_i32_0 = arith.constant 0 : i32
    return %c0_i32, %arg0 : i32, i32
  }
  func.func @transform_2(%arg0: i32) -> (i32, i32) {
    %c0_i32 = arith.constant 0 : i32
    %c0_i32_0 = arith.constant 0 : i32
    return %c0_i32, %arg0 : i32, i32
  }
  func.func @transform_3(%arg0: i32) -> (i32, i32) {
    %c0_i32 = arith.constant 0 : i32
    %c0_i32_0 = arith.constant 0 : i32
    return %arg0, %c0_i32 : i32, i32
  }
}

</mosaic_0001>

<bundles_post_ra>
// kernel: distribution_focal_loss.1
= control target key start
LH: loop header
LB: loop body
LE: loop exit
PB: predicated region body
PF: predicated region fallthrough
CT: control target
= control target key end

     0   :  { %v82_v20 = vlaneseq  ;;  %vm111_vm1 = vcmask 1040384   ;;  %s216_s0 = inlined_call_operand.vmem [shape: f32[32,8], index: 0, kind: input, shape index: {}]   ;;  %s217_s1 = inlined_call_operand.vmem [shape: f32[1,128], index: 1, kind: input, shape index: {}]   ;;  %s218_s2 = inlined_call_operand.vmem [shape: f32[1,128], index: 2, kind: input, shape index: {}]   ;;  %s219_s3 = inlined_call_operand.vmem [shape: f32[8,128], index: 3, kind: output, shape index: {}]  }
   0x1   :  { %v14_v0 = vld [vmem:[%s216_s0] sm:$0xff]  ;;  %v15_v1 = vld [vmem:[%s216_s0 + $0x8] sm:$0xff]  ;;  %v16_v2 = vld [vmem:[%s216_s0 + $0x10] sm:$0xff] }
   0x2   :  { %30 = vxpose.xlu0.b32.start [1/16] (narrow) %v14_v0, 8  ;;  %v17_v3 = vld [vmem:[%s216_s0 + $0x18] sm:$0xff]  ;;  %v18_v4 = vld [vmem:[%s216_s0 + $0x20] sm:$0xff]  ;;  %v19_v5 = vld [vmem:[%s216_s0 + $0x28] sm:$0xff]  ;;  %v83_v23 = vshrl.u32 %v82_v20, 7  ;;  %v103_v48 = vand.u32 127, %v82_v20 }
   0x3   :  { %v20_v6 = vld [vmem:[%s216_s0 + $0x30] sm:$0xff]  ;;  %v21_v7 = vld [vmem:[%s216_s0 + $0x38] sm:$0xff]  ;;  %v22_v8 = vld [vmem:[%s216_s0 + $0x40] sm:$0xff] }
   0x4   :  { %v23_v9 = vld [vmem:[%s216_s0 + $0x48] sm:$0xff]  ;;  %v24_v10 = vld [vmem:[%s216_s0 + $0x50] sm:$0xff]  ;;  %v25_v11 = vld [vmem:[%s216_s0 + $0x58] sm:$0xff]  ;;  %v84_v26 = vcvt.s32.f32 %v83_v23  ;;  %vm107_vm0 = vcmp.lt.s32.totalorder %v103_v48, 32  ;;  %vm122_vm2 = vcmp.eq.s32.totalorder %v83_v23, 0  ;;  %vm123_vm3 = vcmp.eq.s32.totalorder %v103_v48, 0 }
   0x5   :  { %v26_v12 = vld [vmem:[%s216_s0 + $0x60] sm:$0xff]  ;;  %v27_v13 = vld [vmem:[%s216_s0 + $0x68] sm:$0xff]  ;;  %v28_v14 = vld [vmem:[%s216_s0 + $0x70] sm:$0xff] }
   0x6   :  { %31 = vxpose.xlu0.b32.cont [2/16] (narrow) %v15_v1, 8  ;;  %v29_v15 = vld [vmem:[%s216_s0 + $0x78] sm:$0xff]  ;;  %v132_v28 = vld [vmem:[%s217_s1] ss:$0 sm:$0xff]  ;;  %vm124_vm4 = vmand %vm122_vm2, %vm123_vm3 }
   0x7   :  { %v91_v29 = vsub.f32 %v84_v26, %v132_v28  ;;  %v63_v51 = vld [vmem:[%s218_s2] sm:$0x1] }
   0x9   :  { %v92_v30 = vand.u32 2147483647, %v91_v29 }
   0xa   :  { %32 = vxpose.xlu0.b32.cont [3/16] (narrow) %v16_v2, 8 }
   0xb   :  { %v93_v31 = vsub.f32 1.0, %v92_v30 }
   0xd   :  { %v94_v33 = vmax.f32 %v93_v31, 0.0 }
   0xe   :  { %33 = vxpose.xlu0.b32.cont [4/16] (narrow) %v17_v3, 8 }
  0x12   :  { %34 = vxpose.xlu0.b32.cont [5/16] (narrow) %v18_v4, 8 }
  0x16   :  { %35 = vxpose.xlu0.b32.cont [6/16] (narrow) %v19_v5, 8 }
  0x1a   :  { %36 = vxpose.xlu0.b32.cont [7/16] (narrow) %v20_v6, 8 }
  0x1e   :  { %37 = vxpose.xlu0.b32.cont [8/16] (narrow) %v21_v7, 8 }
  0x22   :  { %38 = vxpose.xlu0.b32.cont [9/16] (narrow) %v22_v8, 8 }
  0x26   :  { %39 = vxpose.xlu0.b32.cont [10/16] (narrow) %v23_v9, 8 }
  0x2a   :  { %40 = vxpose.xlu0.b32.cont [11/16] (narrow) %v24_v10, 8 }
  0x2e   :  { %41 = vxpose.xlu0.b32.cont [12/16] (narrow) %v25_v11, 8 }
  0x32   :  { %42 = vxpose.xlu0.b32.cont [13/16] (narrow) %v26_v12, 8 }
  0x36   :  { %43 = vxpose.xlu0.b32.cont [14/16] (narrow) %v27_v13, 8 }
  0x3a   :  { %44 = vxpose.xlu0.b32.cont [15/16] (narrow) %v28_v14, 8 }
  0x3e   :  { %45 = vxpose.xlu0.b32.end [16/16] (narrow) %v29_v15, 8 }
  0x7e   :  { %v46_v16 = vpop.trf.xlu0 }
  0x7f   :  { %v64_v17 = vrot.slane %v46_v16, 4  ;;  %v95_v36 = vmul.f32 %v94_v33, %v46_v16 }
  0x81   :  { %v65_v18 = vmax.f32 %v46_v16, %v64_v17  ;;  %v96_v39 = vrot.slane %v95_v36, 4 }
  0x83   :  { %v66_v19 = vrot.slane %v65_v18, 2  ;;  %v97_v42 = vadd.f32 %v96_v39, %v95_v36 }
  0x85   :  { %v67_v21 = vmax.f32 %v65_v18, %v66_v19  ;;  %v98_v43 = vrot.slane %v97_v42, 2 }
  0x87   :  { %v68_v22 = vrot.slane %v67_v21, 1  ;;  %v99_v44 = vadd.f32 %v98_v43, %v97_v42 }
  0x89   :  { %v69_v24 = vmax.f32 %v67_v21, %v68_v22  ;;  %v100_v45 = vrot.slane %v99_v44, 1 }
  0x8b   :  { %v70_v25 = vsub.f32 %v46_v16, %v69_v24  ;;  %v101_v50 = vadd.f32 %v100_v45, %v99_v44 }
  0x8d   :  { %v71_v27 = vmul.f32 1.442695, %v70_v25 }
  0x8f   :  { %135 = vpow2.f32 %v71_v27 }
  0x9c   :  { %v136_v32 = vpop.eup %135 }
  0x9d   :  { %v73_v34 = vrot.slane %v136_v32, 4 }
  0x9f   :  { %v74_v35 = vadd.f32 %v136_v32, %v73_v34 }
  0xa1   :  { %v75_v37 = vrot.slane %v74_v35, 2 }
  0xa3   :  { %v76_v38 = vadd.f32 %v75_v37, %v74_v35 }
  0xa5   :  { %v77_v40 = vrot.slane %v76_v38, 1 }
  0xa7   :  { %v78_v41 = vadd.f32 %v77_v40, %v76_v38 }
  0xa9   :  { %137 = vlog2.f32 %v78_v41 }
  0xb6   :  { %v138_v46 = vpop.eup %137 }
  0xb7   :  { %v80_v47 = vmul.f32 0.6931472, %v138_v46 }
  0xb9   :  { %v81_v49 = vadd.f32 %v80_v47, %v69_v24 }
  0xbb   :  { %v108_v52 = vsub.f32 %v81_v49, %v101_v50 }
  0xbd   :  { %v109_v53 = vmul.f32 %v108_v52, %v63_v51 }
  0xbf   :  { %v110_v54 = vsel %vm107_vm0, %v109_v53, 0.0 }
  0xc0   :  { %v112_v55 = vsel %vm111_vm1, %v110_v54, 0.0 }
  0xc1   :  { %113 = vadd.xlane.f32.xlu1 %v112_v55 }
 0x14a   :  { %v114_v56 = vpop.xlane.xlu1 %113 }
 0x14b   :  { %v115_v57 = vrot.slane %v114_v56, 4 }
 0x14d   :  { %v116_v58 = vadd.f32 %v115_v57, %v114_v56 }
 0x14f   :  { %v117_v59 = vrot.slane %v116_v58, 2 }
 0x151   :  { %v118_v60 = vadd.f32 %v117_v59, %v116_v58 }
 0x153   :  { %v119_v61 = vrot.slane %v118_v60, 1 }
 0x155   :  { %v120_v62 = vadd.f32 %v119_v61, %v118_v60 }
 0x157   :  { %133 = vpush %v120_v62 }
 0x188   :  { %s134_s19 = spop %133 }
 0x189   :  { %v125_v63 = vstv %s134_s19 }
 0x18a   :  { %v126_v0 = vsel %vm124_vm4, %v125_v63, 0.0 }
 0x18b   :  { %127 = vst [vmem:[%s219_s3] sm:$0xff] %v126_v0 }

</bundles_post_ra>
